<compile_context>
chip_gen: v5e
topology: v5e:2x2
jax: 0.10.0
libtpu: 0.0.40
codegen_flags: <defaults>
</compile_context>

<pallas_src>
import jax
import jax.numpy as jnp
from jax.experimental import pallas as pl
from jax.experimental.pallas import tpu as pltpu


def _bias_quant_kernel(s_ref, x_ref, o_ref):
    # out = round(x * r) * (1/r)   (jnp.round == torch.round: half-to-even)
    r = s_ref[0]            # f32 scalar from SMEM
    inv_r = s_ref[1]        # precomputed 1/x_range (matches torch's mul(1/x_range))
    x = x_ref[...].astype(jnp.float32)
    o_ref[...] = (jnp.round(x * r) * inv_r).astype(o_ref.dtype)


_LANE_CANDIDATES = (4096, 2048, 1024, 512, 256, 128)
_TARGET_BLOCK_BYTES = 4 << 20          # ~4 MiB blocks (review: 2-4 MiB, 4 on v7x)
_TINY_N = 128                          # below this, plain XLA fuses better than a launch


def bias_quantizer(x, x_range):
    """Forward pass of BiasQuantizer: fake-quantize x with scale x_range."""
    orig_shape = x.shape
    dtype = x.dtype
    n = x.size
    itemsize = jnp.dtype(dtype).itemsize

    r = jnp.asarray(x_range, dtype=jnp.float32).reshape(())
    scale = jnp.stack([r, 1.0 / r])                      # (2,) f32 -> SMEM

    if n == 0:
        return x
    if n <= _TINY_N:
        # Launch + single-block DMA would dominate at this size; let XLA fuse it.
        # (Callers with many tiny bias tensors should batch them into one call.)
        xf = x.astype(jnp.float32)
        return (jnp.round(xf * scale[0]) * scale[1]).astype(dtype)

    sub = max(8, 32 // itemsize)       # sublane multiple: f32 -> 8, bf16 -> 16, int8 -> 32
    last = orig_shape[-1] if len(orig_shape) >= 1 else 1

    tail = None
    if last % 128 == 0 and last * itemsize * sub <= _TARGET_BLOCK_BYTES:
        # Free reshape: collapse leading dims only, keep the native lane-dense last dim.
        lane = last
        x2d = x.reshape(-1, lane)
    else:
        lane = next((w for w in _LANE_CANDIDATES if n % w == 0), None)
        if lane is not None:
            # numel is a multiple of 128: flatten to a lane-dense slab.
            # (If the native last dim is < 128 this reshape may relayout, but such
            #  tensors are bias-sized, so the one-off cost is negligible.)
            x2d = x.reshape(-1, lane)
        elif n * itemsize <= _TARGET_BLOCK_BYTES:
            # Odd-sized tensor that fits a single block: full-array block is exempt
            # from the (8,128) divisibility rule -> no pad, no slice epilogue.
            lane = n
            x2d = x.reshape(1, n)
        else:
            # TODO(synk): large odd-sized tensor -- main slab through the kernel,
            # tail via plain jnp; the concatenate is one extra HBM pass.
            lane = 128
            main = (n // lane) * lane
            flat = x.reshape(-1)
            x2d = flat[:main].reshape(-1, lane)
            tail = flat[main:]

    rows = x2d.shape[0]
    total_bytes = rows * lane * itemsize

    # Block sizing: aim for ~4 MiB blocks; full-array block for small inputs.
    row_tile = max(sub, _TARGET_BLOCK_BYTES // (lane * itemsize))
    if total_bytes >= (2 << 20) and rows > sub:
        # Ensure >= 2 grid blocks so v7x's two TensorCores both get streaming work.
        half = pl.cdiv(pl.cdiv(rows, 2), sub) * sub
        row_tile = min(row_tile, half)
    row_tile = min(row_tile, rows)
    if row_tile < rows:
        row_tile = max(sub, (row_tile // sub) * sub)   # keep (sub,128)-aligned blocks

    grid = (pl.cdiv(rows, row_tile),)

    # Explicit VMEM budget: 2x double-buffered I/O blocks + f32 compute temps + slack.
    block_bytes = row_tile * lane * itemsize
    block_f32_bytes = row_tile * lane * 4
    vmem_limit = int(min(max(4 * block_bytes + 2 * block_f32_bytes + (2 << 20),
                             16 << 20), 48 << 20))

    out2d = pl.pallas_call(
        _bias_quant_kernel,
        out_shape=jax.ShapeDtypeStruct((rows, lane), dtype),
        grid=grid,
        in_specs=[
            pl.BlockSpec(memory_space=pltpu.MemorySpace.SMEM),      # (r, 1/r) scalars
            pl.BlockSpec((row_tile, lane), lambda i: (i, 0)),       # x tiles
        ],
        out_specs=pl.BlockSpec((row_tile, lane), lambda i: (i, 0)),
        compiler_params=pltpu.CompilerParams(
            dimension_semantics=("parallel",),
            vmem_limit_bytes=vmem_limit),
    )(scale, x2d)

    if tail is not None:
        tf = tail.astype(jnp.float32)
        tail_q = (jnp.round(tf * scale[0]) * scale[1]).astype(dtype)
        out = jnp.concatenate([out2d.reshape(-1), tail_q]).reshape(orig_shape)
    else:
        out = out2d.reshape(orig_shape)
    return out


if __name__ == "__main__":
    key = jax.random.PRNGKey(0)
    k0, k1, k2 = jax.random.split(key, 3)
    x_range = 127.0  # module __init__ constant
    inv = 1.0 / x_range

    def ref_fn(v):
        return (jnp.round(v.astype(jnp.float32) * x_range) * inv).astype(v.dtype)

    # Primary test: small NCHW tensor (n % 128 == 0, flattened lane-dense slab path).
    x = jax.random.normal(k0, (2, 4, 16, 16), dtype=jnp.float32)
    out = jax.block_until_ready(bias_quantizer(x, x_range))
    assert out.shape == x.shape and out.dtype == x.dtype
    assert jnp.allclose(out, ref_fn(x), atol=1e-6), "mismatch vs reference (NCHW)"

    # Native-last-dim path (last dim multiple of 128 -> free reshape, grid over rows).
    x2 = jax.random.normal(k1, (4, 8, 128), dtype=jnp.float32)
    out2 = jax.block_until_ready(bias_quantizer(x2, x_range))
    assert jnp.allclose(out2, ref_fn(x2), atol=1e-6), "mismatch vs reference (lane-dense)"

    # Odd-sized path (numel not a multiple of 128 -> single full-array block, no pad).
    x3 = jax.random.normal(k2, (5, 33), dtype=jnp.float32)
    out3 = jax.block_until_ready(bias_quantizer(x3, x_range))
    assert out3.shape == x3.shape and out3.dtype == x3.dtype
    assert jnp.allclose(out3, ref_fn(x3), atol=1e-6), "mismatch vs reference (odd n)"

    print("KERNEL_OK")
</pallas_src>

<mosaic_0001>
module attributes {stable_mosaic.version = 11 : i64} {
  func.func @_bias_quant_kernel(%arg0: i32, %arg1: memref<2xf32, #tpu.memory_space<smem>>, %arg2: memref<1x2048xf32, #tpu.memory_space<vmem>>, %arg3: memref<1x2048xf32, #tpu.memory_space<vmem>>) attributes {dimension_semantics = [#tpu.dimension_semantics<parallel>], iteration_bounds = array<i64: 1>, scalar_prefetch = 0 : i64, scratch_operands = 0 : i64, tpu.core_type = #tpu.core_type<tc>, window_params = [{transform_indices = @transform_0, window_bounds = array<i64: 2>}, {transform_indices = @transform_1, window_bounds = array<i64: 1, 2048>}, {transform_indices = @transform_2, window_bounds = array<i64: 1, 2048>}]} {
    %c0 = arith.constant 0 : index
    %0 = memref.load %arg1[%c0] : memref<2xf32, #tpu.memory_space<smem>>
    %c1 = arith.constant 1 : index
    %1 = memref.load %arg1[%c1] : memref<2xf32, #tpu.memory_space<smem>>
    %c0_0 = arith.constant 0 : index
    %c0_1 = arith.constant 0 : index
    %2 = vector.load %arg2[%c0_0, %c0_1] : memref<1x2048xf32, #tpu.memory_space<vmem>>, vector<1x2048xf32>
    %3 = vector.broadcast %0 : f32 to vector<1x2048xf32>
    %4 = arith.mulf %2, %3 : vector<1x2048xf32>
    %5 = math.roundeven %4 : vector<1x2048xf32>
    %6 = vector.broadcast %1 : f32 to vector<1x2048xf32>
    %7 = arith.mulf %5, %6 : vector<1x2048xf32>
    %c0_2 = arith.constant 0 : index
    %c0_3 = arith.constant 0 : index
    %8 = vector.load %arg3[%c0_2, %c0_3] : memref<1x2048xf32, #tpu.memory_space<vmem>>, vector<1x2048xf32>
    tpu.vector_store %arg3[%c0_2, %c0_3], %7 {strides = array<i32>} : memref<1x2048xf32, #tpu.memory_space<vmem>>, vector<1x2048xf32>,
    return
  }
  func.func @transform_0(%arg0: i32) -> i32 {
    %c0_i32 = arith.constant 0 : i32
    %c0_i32_0 = arith.constant 0 : i32
    return %c0_i32 : i32
  }
  func.func @transform_1(%arg0: i32) -> (i32, i32) {
    %c0_i32 = arith.constant 0 : i32
    %c0_i32_0 = arith.constant 0 : i32
    return %arg0, %c0_i32 : i32, i32
  }
  func.func @transform_2(%arg0: i32) -> (i32, i32) {
    %c0_i32 = arith.constant 0 : i32
    %c0_i32_0 = arith.constant 0 : i32
    return %arg0, %c0_i32 : i32, i32
  }
}

</mosaic_0001>

<bundles_post_ra>
// kernel: tpu_custom_call.1
= control target key start
LH: loop header
LB: loop body
LE: loop exit
PB: predicated region body
PF: predicated region fallthrough
CT: control target
= control target key end

     0   :  { %7 = vsyncpa [#allocation5], 0  ;;  %s184_s0 = inlined_call_operand.hbm [shape: f32[2], index: 0, kind: input, shape index: {}]   ;;  %s185_s1 = inlined_call_operand.hbm [shape: f32[1,2048], index: 1, kind: input, shape index: {}]   ;;  %s186_s2 = inlined_call_operand.hbm [shape: f32[1,2048], index: 2, kind: output, shape index: {}]  }
   0x1   :  { %8 = vsyncpa [#allocation3], 0 }
   0x2   :  { %9 = vsyncpa [#allocation4], 0  ;;  %s15_s11 = sshll.u32 %s184_s0, 4  ;;  %s24_s14 = sshll.u32 %s185_s1, 4  ;;  %s16_s11 = int_to_ptr.hbm [resolvable:$true] %s15_s11  ;;  %s25_s14 = int_to_ptr.hbm [resolvable:$true] %s24_s14 }
   0x3   :  { %s157_s15 = smov [#allocation2]   ;;  %s158_s16 = smov [#allocation6]  }
   0x4   :  { %18 = dma.hbm_to_smem %s16_s11, 16, %s157_s15, [#allocation5]  }
   0x5   :  { %s26_s17 = sshll.u32 %s158_s16, 4  ;;  %s27_s17 = int_to_ptr.vmem [resolvable:$true] %s26_s17 }
   0x6   :  { %29 = dma.hbm_to_vmem [thread:$0]  %s25_s14, 256, %s27_s17, [#allocation3]  }
   0x7   :  { %151 = dma.done.wait [#allocation5], 16  }
   0x8   :  { %152 = vsyncadd [#allocation5], 4294967280 }
   0x9   :  { %153 = dma.done.wait [#allocation3], 256  }
   0xa   :  { %154 = vsyncadd [#allocation3], 4294967040 }
   0xb   :  { %38 = sfence }
   0xc   :  { %s39_s18 = sld [smem:[#allocation2]]  ;;  %v41_v0 = vld [vmem:[#allocation6] sm:$0xff]  ;;  %v42_v1 = vld [vmem:[#allocation6 + $0x8] sm:$0xff]  ;;  %s159_s1 = smov [#allocation7]  }
   0xd   :  { %s71_s0 = sld [smem:[#allocation2 + $0x1]]  ;;  %s58_s19 = sshll.u32 %s159_s1, 4  ;;  %s59_s19 = int_to_ptr.vmem [resolvable:$true] %s58_s19 }
   0xe   :  { %s60_s22 = sshll.u32 %s186_s2, 4  ;;  %s61_s22 = int_to_ptr.hbm [resolvable:$true] %s60_s22 }
  0x12   :  { %v43_v2 = vstv %s39_s18 }
  0x13   :  { %v44_v3 = vmul.f32 %v43_v2, %v41_v0  ;;  %v45_v4 = vmul.f32 %v43_v2, %v42_v1  ;;  %v48_v16 = vstv %s71_s0 }
  0x15   :  { %v74_v5 = vcvt.f32.s32 %v44_v3  ;;  %v72_v6 = vand.u32 2147483647, %v44_v3  ;;  %v82_v7 = vcvt.f32.s32 %v45_v4  ;;  %v77_v9 = vand.u32 2147483648, %v44_v3 }
  0x16   :  { %v80_v10 = vand.u32 2147483647, %v45_v4  ;;  %v85_v12 = vand.u32 2147483648, %v45_v4 }
  0x17   :  { %v75_v8 = vcvt.s32.f32 %v74_v5  ;;  %v83_v11 = vcvt.s32.f32 %v82_v7  ;;  %vm73_vm0 = vcmp.lt.f32.partialorder %v72_v6, 8388608.0 }
  0x18   :  { %vm81_vm1 = vcmp.lt.f32.partialorder %v80_v10, 8388608.0 }
  0x19   :  { %v76_v13 = vand.u32 2147483647, %v75_v8  ;;  %v84_v14 = vand.u32 2147483647, %v83_v11 }
  0x1b   :  { %v78_v15 = vor.u32 %v77_v9, %v76_v13  ;;  %v86_v17 = vor.u32 %v85_v12, %v84_v14 }
  0x1d   :  { %v79_v18 = vsel %vm73_vm0, %v78_v15, %v44_v3  ;;  %v87_v20 = vsel %vm81_vm1, %v86_v17, %v45_v4 }
  0x1e   :  { %v49_v19 = vmul.f32 %v79_v18, %v48_v16  ;;  %v50_v21 = vmul.f32 %v87_v20, %v48_v16 }
  0x20   :  { %51 = vst [vmem:[#allocation7] sm:$0xff] %v49_v19 }
  0x21   :  { %52 = vst [vmem:[#allocation7 + $0x8] sm:$0xff] %v50_v21 }
  0x22   :  { %63 = dma.vmem_to_hbm [thread:$0]  %s59_s19, 256, %s61_s22, [#allocation4]  }
  0x23   :  { %155 = dma.done.wait [#allocation4], 256  }
  0x24   :  { %156 = vsyncadd [#allocation4], 4294967040 }
  0x25   :  { %68 = vsyncpa [#allocation3], 1 }
  0x26   :  { %69 = vsyncpa [#allocation4], 1 }
  0x27   :  { %70 = vsyncpa [#allocation5], 1 }

</bundles_post_ra>
